<compile_context>
chip_gen: v6e
topology: v6e:2x2x1
jax: 0.10.0
libtpu: 0.0.40
codegen_flags: <defaults>
</compile_context>

<pallas_src>
import functools
import math

import jax
import jax.numpy as jnp
from jax.experimental import pallas as pl
from jax.experimental.pallas import tpu as pltpu


# Max rows (tokens) gathered per grid step.  Multiple of 32 so the (rows, D)
# output block meets the sublane tile minimum for f32 (8), bf16 (16) and
# int8 (32).  Sweep 128-512: v7x prefers the high end (needs more outstanding
# DMAs to cover ~3.2 TB/s HBM), v5e is fine at 128.
MAX_ROWS_PER_STEP = 256

# Tables at or below this size are kept resident in VMEM (fetched from HBM
# once by the pipeline) and gathered with fast local VMEM->VMEM copies.
# 4 MiB is safe on every generation (default scoped VMEM: 16 MiB v5e,
# 32 MiB v6e/v7x) and leaves headroom for the double-buffered output blocks.
# TODO(synk): make this threshold generation-aware (raise on v5e/v6e together
# with vmem_limit_bytes; keep low on v7x with its 64 MiB physical VMEM).
VMEM_TABLE_BYTES = 4 * 1024 * 1024

# Scalar-prefetched ids land in SMEM (padded to next_pow2(4*N) bytes), so cap
# the tokens handled by a single pallas_call and chunk above that.
MAX_TOKENS_PER_CALL = 32768


def _round_up(x, m):
    return ((x + m - 1) // m) * m


def _embedding_gather_kernel(rows_per_step, ids_ref, table_ref, out_ref, sem):
    """Gather `rows_per_step` embedding rows into the output block via DMA.

    ids_ref:   (n_pad,) int32 token ids in SMEM (scalar-prefetched).
    table_ref: (V, D) embedding table — either a raw HBM ref
               (memory_space=pl.ANY) or a VMEM-resident full-array block
               (small-table fast path); the body is identical for both.
    out_ref:   (rows_per_step, D) VMEM output block; DMAs land directly in it.
    sem:       single shared DMA-completion semaphore.
    """
    base = pl.program_id(0) * rows_per_step

    # Read every id from SMEM before any DMA wait (waits break sst->sld
    # forwarding), then issue all row copies before waiting on any of them so
    # the copies overlap each other.
    rows = [ids_ref[base + j] for j in range(rows_per_step)]

    copies = []
    for j in range(rows_per_step):
        cp = pltpu.make_async_copy(
            table_ref.at[pl.ds(rows[j], 1), :],
            out_ref.at[pl.ds(j, 1), :],
            sem,
        )
        cp.start()
        copies.append(cp)

    for cp in copies:
        cp.wait()
    # TODO(synk): optionally pl.when-guard the padded-tail rows of the final
    # grid step to skip up to rows_per_step-1 wasted row fetches.


def _embedding_call(ids_flat, table, rows_per_step, table_in_vmem):
    """One pallas_call over a padded, flat chunk of ids."""
    (n_pad,) = ids_flat.shape
    V, D = table.shape

    if table_in_vmem:
        # Full-array VMEM block, constant index_map -> fetched from HBM once
        # and reused across every grid step; row copies are VMEM->VMEM.
        table_spec = pl.BlockSpec((V, D), lambda i, ids: (0, 0))
    else:
        # Table stays in HBM; only the requested rows ever leave HBM.
        table_spec = pl.BlockSpec(memory_space=pl.ANY)

    return pl.pallas_call(
        functools.partial(_embedding_gather_kernel, rows_per_step),
        out_shape=jax.ShapeDtypeStruct((n_pad, D), table.dtype),
        grid_spec=pltpu.PrefetchScalarGridSpec(
            num_scalar_prefetch=1,                 # ids -> SMEM
            grid=(n_pad // rows_per_step,),
            in_specs=[table_spec],
            out_specs=pl.BlockSpec((rows_per_step, D), lambda i, ids: (i, 0)),
            scratch_shapes=[pltpu.SemaphoreType.DMA],   # one shared DMA sem
        ),
        compiler_params=pltpu.CompilerParams(
            # Token-block axis is independent -> shard across TensorCores
            # (2 TCs on v7x); harmless on single-TC chips.
            dimension_semantics=("parallel",),
        ),
    )(ids_flat, table)


def embedding_lookup(ids, table, *, vmem_table_bytes=VMEM_TABLE_BYTES):
    """ids: int token ids (any shape); table: (V, D) -> ids.shape + (D,)."""
    V, D = table.shape
    lead_shape = ids.shape
    N = math.prod(lead_shape)

    # Clamp so the DMA gather stays in bounds (nn.Embedding would raise).
    ids_flat = jnp.clip(ids.reshape(N).astype(jnp.int32), 0, V - 1)

    table_in_vmem = V * D * table.dtype.itemsize <= vmem_table_bytes

    outs = []
    for start in range(0, N, MAX_TOKENS_PER_CALL):
        n_chunk = min(MAX_TOKENS_PER_CALL, N - start)
        rows_per_step = min(MAX_ROWS_PER_STEP, _round_up(n_chunk, 32))
        n_pad = _round_up(n_chunk, rows_per_step)

        ids_chunk = ids_flat[start:start + n_chunk]
        if n_pad != n_chunk:
            # Padded tail tokens gather row 0 and are sliced off below.
            ids_chunk = jnp.pad(ids_chunk, (0, n_pad - n_chunk))

        out = _embedding_call(ids_chunk, table, rows_per_step, table_in_vmem)
        outs.append(out[:n_chunk])

    out_flat = outs[0] if len(outs) == 1 else jnp.concatenate(outs, axis=0)
    return out_flat.reshape(*lead_shape, D)


if __name__ == "__main__":
    key = jax.random.PRNGKey(0)
    k_tab, k_ids = jax.random.split(key)

    vocab_size = 64
    embedding_dim = 128
    batch, seq = 2, 8

    # Deterministic "parameters": the embedding table (V, D).
    table = jax.random.normal(k_tab, (vocab_size, embedding_dim), dtype=jnp.float32)
    # Deterministic inputs: token ids (B, S).
    ids = jax.random.randint(k_ids, (batch, seq), 0, vocab_size, dtype=jnp.int32)

    ref = table[ids]

    # Small table -> VMEM-resident fast path (local VMEM->VMEM row copies).
    out_fast = jax.block_until_ready(embedding_lookup(ids, table))
    assert out_fast.shape == (batch, seq, embedding_dim)
    assert jnp.allclose(out_fast, ref, atol=1e-6), "fast path mismatch vs reference"

    # Force the large-table path (table stays in HBM, per-row DMA gather).
    out_hbm = jax.block_until_ready(
        embedding_lookup(ids, table, vmem_table_bytes=0))
    assert jnp.allclose(out_hbm, ref, atol=1e-6), "HBM path mismatch vs reference"

    print("KERNEL_OK")
</pallas_src>

<mosaic_0001>
module attributes {stable_mosaic.version = 11 : i64} {
  func.func @_embedding_gather_kernel(%arg0: i32, %arg1: memref<32xi32, #tpu.memory_space<smem>>, %arg2: memref<64x128xf32, #tpu.memory_space<vmem>>, %arg3: memref<32x128xf32, #tpu.memory_space<vmem>>, %arg4: memref<!tpu.dma_semaphore, #tpu.memory_space<semaphore_mem>>) attributes {dimension_semantics = [#tpu.dimension_semantics<parallel>], iteration_bounds = array<i64: 1>, scalar_prefetch = 1 : i64, scratch_operands = 1 : i64, tpu.core_type = #tpu.core_type<tc>, window_params = [{pipeline_mode = #tpu.pipeline_mode<synchronous>, transform_indices = @transform_0, window_bounds = array<i64: 64, 128>}, {transform_indices = @transform_1, window_bounds = array<i64: 32, 128>}]} {
    %c32_i32 = arith.constant 32 : i32
    %0 = arith.muli %arg0, %c32_i32 : i32
    %c0_i32 = arith.constant 0 : i32
    %1 = arith.addi %0, %c0_i32 : i32
    %2 = arith.index_cast %1 : i32 to index
    %3 = memref.load %arg1[%2] : memref<32xi32, #tpu.memory_space<smem>>
    %c1_i32 = arith.constant 1 : i32
    %4 = arith.addi %0, %c1_i32 : i32
    %5 = arith.index_cast %4 : i32 to index
    %6 = memref.load %arg1[%5] : memref<32xi32, #tpu.memory_space<smem>>
    %c2_i32 = arith.constant 2 : i32
    %7 = arith.addi %0, %c2_i32 : i32
    %8 = arith.index_cast %7 : i32 to index
    %9 = memref.load %arg1[%8] : memref<32xi32, #tpu.memory_space<smem>>
    %c3_i32 = arith.constant 3 : i32
    %10 = arith.addi %0, %c3_i32 : i32
    %11 = arith.index_cast %10 : i32 to index
    %12 = memref.load %arg1[%11] : memref<32xi32, #tpu.memory_space<smem>>
    %c4_i32 = arith.constant 4 : i32
    %13 = arith.addi %0, %c4_i32 : i32
    %14 = arith.index_cast %13 : i32 to index
    %15 = memref.load %arg1[%14] : memref<32xi32, #tpu.memory_space<smem>>
    %c5_i32 = arith.constant 5 : i32
    %16 = arith.addi %0, %c5_i32 : i32
    %17 = arith.index_cast %16 : i32 to index
    %18 = memref.load %arg1[%17] : memref<32xi32, #tpu.memory_space<smem>>
    %c6_i32 = arith.constant 6 : i32
    %19 = arith.addi %0, %c6_i32 : i32
    %20 = arith.index_cast %19 : i32 to index
    %21 = memref.load %arg1[%20] : memref<32xi32, #tpu.memory_space<smem>>
    %c7_i32 = arith.constant 7 : i32
    %22 = arith.addi %0, %c7_i32 : i32
    %23 = arith.index_cast %22 : i32 to index
    %24 = memref.load %arg1[%23] : memref<32xi32, #tpu.memory_space<smem>>
    %c8_i32 = arith.constant 8 : i32
    %25 = arith.addi %0, %c8_i32 : i32
    %26 = arith.index_cast %25 : i32 to index
    %27 = memref.load %arg1[%26] : memref<32xi32, #tpu.memory_space<smem>>
    %c9_i32 = arith.constant 9 : i32
    %28 = arith.addi %0, %c9_i32 : i32
    %29 = arith.index_cast %28 : i32 to index
    %30 = memref.load %arg1[%29] : memref<32xi32, #tpu.memory_space<smem>>
    %c10_i32 = arith.constant 10 : i32
    %31 = arith.addi %0, %c10_i32 : i32
    %32 = arith.index_cast %31 : i32 to index
    %33 = memref.load %arg1[%32] : memref<32xi32, #tpu.memory_space<smem>>
    %c11_i32 = arith.constant 11 : i32
    %34 = arith.addi %0, %c11_i32 : i32
    %35 = arith.index_cast %34 : i32 to index
    %36 = memref.load %arg1[%35] : memref<32xi32, #tpu.memory_space<smem>>
    %c12_i32 = arith.constant 12 : i32
    %37 = arith.addi %0, %c12_i32 : i32
    %38 = arith.index_cast %37 : i32 to index
    %39 = memref.load %arg1[%38] : memref<32xi32, #tpu.memory_space<smem>>
    %c13_i32 = arith.constant 13 : i32
    %40 = arith.addi %0, %c13_i32 : i32
    %41 = arith.index_cast %40 : i32 to index
    %42 = memref.load %arg1[%41] : memref<32xi32, #tpu.memory_space<smem>>
    %c14_i32 = arith.constant 14 : i32
    %43 = arith.addi %0, %c14_i32 : i32
    %44 = arith.index_cast %43 : i32 to index
    %45 = memref.load %arg1[%44] : memref<32xi32, #tpu.memory_space<smem>>
    %c15_i32 = arith.constant 15 : i32
    %46 = arith.addi %0, %c15_i32 : i32
    %47 = arith.index_cast %46 : i32 to index
    %48 = memref.load %arg1[%47] : memref<32xi32, #tpu.memory_space<smem>>
    %c16_i32 = arith.constant 16 : i32
    %49 = arith.addi %0, %c16_i32 : i32
    %50 = arith.index_cast %49 : i32 to index
    %51 = memref.load %arg1[%50] : memref<32xi32, #tpu.memory_space<smem>>
    %c17_i32 = arith.constant 17 : i32
    %52 = arith.addi %0, %c17_i32 : i32
    %53 = arith.index_cast %52 : i32 to index
    %54 = memref.load %arg1[%53] : memref<32xi32, #tpu.memory_space<smem>>
    %c18_i32 = arith.constant 18 : i32
    %55 = arith.addi %0, %c18_i32 : i32
    %56 = arith.index_cast %55 : i32 to index
    %57 = memref.load %arg1[%56] : memref<32xi32, #tpu.memory_space<smem>>
    %c19_i32 = arith.constant 19 : i32
    %58 = arith.addi %0, %c19_i32 : i32
    %59 = arith.index_cast %58 : i32 to index
    %60 = memref.load %arg1[%59] : memref<32xi32, #tpu.memory_space<smem>>
    %c20_i32 = arith.constant 20 : i32
    %61 = arith.addi %0, %c20_i32 : i32
    %62 = arith.index_cast %61 : i32 to index
    %63 = memref.load %arg1[%62] : memref<32xi32, #tpu.memory_space<smem>>
    %c21_i32 = arith.constant 21 : i32
    %64 = arith.addi %0, %c21_i32 : i32
    %65 = arith.index_cast %64 : i32 to index
    %66 = memref.load %arg1[%65] : memref<32xi32, #tpu.memory_space<smem>>
    %c22_i32 = arith.constant 22 : i32
    %67 = arith.addi %0, %c22_i32 : i32
    %68 = arith.index_cast %67 : i32 to index
    %69 = memref.load %arg1[%68] : memref<32xi32, #tpu.memory_space<smem>>
    %c23_i32 = arith.constant 23 : i32
    %70 = arith.addi %0, %c23_i32 : i32
    %71 = arith.index_cast %70 : i32 to index
    %72 = memref.load %arg1[%71] : memref<32xi32, #tpu.memory_space<smem>>
    %c24_i32 = arith.constant 24 : i32
    %73 = arith.addi %0, %c24_i32 : i32
    %74 = arith.index_cast %73 : i32 to index
    %75 = memref.load %arg1[%74] : memref<32xi32, #tpu.memory_space<smem>>
    %c25_i32 = arith.constant 25 : i32
    %76 = arith.addi %0, %c25_i32 : i32
    %77 = arith.index_cast %76 : i32 to index
    %78 = memref.load %arg1[%77] : memref<32xi32, #tpu.memory_space<smem>>
    %c26_i32 = arith.constant 26 : i32
    %79 = arith.addi %0, %c26_i32 : i32
    %80 = arith.index_cast %79 : i32 to index
    %81 = memref.load %arg1[%80] : memref<32xi32, #tpu.memory_space<smem>>
    %c27_i32 = arith.constant 27 : i32
    %82 = arith.addi %0, %c27_i32 : i32
    %83 = arith.index_cast %82 : i32 to index
    %84 = memref.load %arg1[%83] : memref<32xi32, #tpu.memory_space<smem>>
    %c28_i32 = arith.constant 28 : i32
    %85 = arith.addi %0, %c28_i32 : i32
    %86 = arith.index_cast %85 : i32 to index
    %87 = memref.load %arg1[%86] : memref<32xi32, #tpu.memory_space<smem>>
    %c29_i32 = arith.constant 29 : i32
    %88 = arith.addi %0, %c29_i32 : i32
    %89 = arith.index_cast %88 : i32 to index
    %90 = memref.load %arg1[%89] : memref<32xi32, #tpu.memory_space<smem>>
    %c30_i32 = arith.constant 30 : i32
    %91 = arith.addi %0, %c30_i32 : i32
    %92 = arith.index_cast %91 : i32 to index
    %93 = memref.load %arg1[%92] : memref<32xi32, #tpu.memory_space<smem>>
    %c31_i32 = arith.constant 31 : i32
    %94 = arith.addi %0, %c31_i32 : i32
    %95 = arith.index_cast %94 : i32 to index
    %96 = memref.load %arg1[%95] : memref<32xi32, #tpu.memory_space<smem>>
    %c0_i32_0 = arith.constant 0 : i32
    %97 = tpu.memref_slice %arg2[%3, %c0_i32_0] : memref<64x128xf32, #tpu.memory_space<vmem>> -> memref<1x128xf32, #tpu.memory_space<vmem>>
    %c0_i32_1 = arith.constant 0 : i32
    %c0_i32_2 = arith.constant 0 : i32
    %98 = tpu.memref_slice %arg3[%c0_i32_1, %c0_i32_2] : memref<32x128xf32, #tpu.memory_space<vmem>> -> memref<1x128xf32, #tpu.memory_space<vmem>>
    tpu.enqueue_dma source(%97 : memref<1x128xf32, #tpu.memory_space<vmem>>) target(%98 : memref<1x128xf32, #tpu.memory_space<vmem>>) target_semaphore(%arg4 : memref<!tpu.dma_semaphore, #tpu.memory_space<semaphore_mem>>)
    %c0_i32_3 = arith.constant 0 : i32
    %99 = tpu.memref_slice %arg2[%6, %c0_i32_3] : memref<64x128xf32, #tpu.memory_space<vmem>> -> memref<1x128xf32, #tpu.memory_space<vmem>>
    %c1_i32_4 = arith.constant 1 : i32
    %c0_i32_5 = arith.constant 0 : i32
    %100 = tpu.memref_slice %arg3[%c1_i32_4, %c0_i32_5] : memref<32x128xf32, #tpu.memory_space<vmem>> -> memref<1x128xf32, #tpu.memory_space<vmem>>
    tpu.enqueue_dma source(%99 : memref<1x128xf32, #tpu.memory_space<vmem>>) target(%100 : memref<1x128xf32, #tpu.memory_space<vmem>>) target_semaphore(%arg4 : memref<!tpu.dma_semaphore, #tpu.memory_space<semaphore_mem>>)
    %c0_i32_6 = arith.constant 0 : i32
    %101 = tpu.memref_slice %arg2[%9, %c0_i32_6] : memref<64x128xf32, #tpu.memory_space<vmem>> -> memref<1x128xf32, #tpu.memory_space<vmem>>
    %c2_i32_7 = arith.constant 2 : i32
    %c0_i32_8 = arith.constant 0 : i32
    %102 = tpu.memref_slice %arg3[%c2_i32_7, %c0_i32_8] : memref<32x128xf32, #tpu.memory_space<vmem>> -> memref<1x128xf32, #tpu.memory_space<vmem>>
    tpu.enqueue_dma source(%101 : memref<1x128xf32, #tpu.memory_space<vmem>>) target(%102 : memref<1x128xf32, #tpu.memory_space<vmem>>) target_semaphore(%arg4 : memref<!tpu.dma_semaphore, #tpu.memory_space<semaphore_mem>>)
    %c0_i32_9 = arith.constant 0 : i32
    %103 = tpu.memref_slice %arg2[%12, %c0_i32_9] : memref<64x128xf32, #tpu.memory_space<vmem>> -> memref<1x128xf32, #tpu.memory_space<vmem>>
    %c3_i32_10 = arith.constant 3 : i32
    %c0_i32_11 = arith.constant 0 : i32
    %104 = tpu.memref_slice %arg3[%c3_i32_10, %c0_i32_11] : memref<32x128xf32, #tpu.memory_space<vmem>> -> memref<1x128xf32, #tpu.memory_space<vmem>>
    tpu.enqueue_dma source(%103 : memref<1x128xf32, #tpu.memory_space<vmem>>) target(%104 : memref<1x128xf32, #tpu.memory_space<vmem>>) target_semaphore(%arg4 : memref<!tpu.dma_semaphore, #tpu.memory_space<semaphore_mem>>)
    %c0_i32_12 = arith.constant 0 : i32
    %105 = tpu.memref_slice %arg2[%15, %c0_i32_12] : memref<64x128xf32, #tpu.memory_space<vmem>> -> memref<1x128xf32, #tpu.memory_space<vmem>>
    %c4_i32_13 = arith.constant 4 : i32
    %c0_i32_14 = arith.constant 0 : i32
    %106 = tpu.memref_slice %arg3[%c4_i32_13, %c0_i32_14] : memref<32x128xf32, #tpu.memory_space<vmem>> -> memref<1x128xf32, #tpu.memory_space<vmem>>
    tpu.enqueue_dma source(%105 : memref<1x128xf32, #tpu.memory_space<vmem>>) target(%106 : memref<1x128xf32, #tpu.memory_space<vmem>>) target_semaphore(%arg4 : memref<!tpu.dma_semaphore, #tpu.memory_space<semaphore_mem>>)
    %c0_i32_15 = arith.constant 0 : i32
    %107 = tpu.memref_slice %arg2[%18, %c0_i32_15] : memref<64x128xf32, #tpu.memory_space<vmem>> -> memref<1x128xf32, #tpu.memory_space<vmem>>
    %c5_i32_16 = arith.constant 5 : i32
    %c0_i32_17 = arith.constant 0 : i32
    %108 = tpu.memref_slice %arg3[%c5_i32_16, %c0_i32_17] : memref<32x128xf32, #tpu.memory_space<vmem>> -> memref<1x128xf32, #tpu.memory_space<vmem>>
    tpu.enqueue_dma source(%107 : memref<1x128xf32, #tpu.memory_space<vmem>>) target(%108 : memref<1x128xf32, #tpu.memory_space<vmem>>) target_semaphore(%arg4 : memref<!tpu.dma_semaphore, #tpu.memory_space<semaphore_mem>>)
    %c0_i32_18 = arith.constant 0 : i32
    %109 = tpu.memref_slice %arg2[%21, %c0_i32_18] : memref<64x128xf32, #tpu.memory_space<vmem>> -> memref<1x128xf32, #tpu.memory_space<vmem>>
    %c6_i32_19 = arith.constant 6 : i32
    %c0_i32_20 = arith.constant 0 : i32
    %110 = tpu.memref_slice %arg3[%c6_i32_19, %c0_i32_20] : memref<32x128xf32, #tpu.memory_space<vmem>> -> memref<1x128xf32, #tpu.memory_space<vmem>>
    tpu.enqueue_dma source(%109 : memref<1x128xf32, #tpu.memory_space<vmem>>) target(%110 : memref<1x128xf32, #tpu.memory_space<vmem>>) target_semaphore(%arg4 : memref<!tpu.dma_semaphore, #tpu.memory_space<semaphore_mem>>)
    %c0_i32_21 = arith.constant 0 : i32
    %111 = tpu.memref_slice %arg2[%24, %c0_i32_21] : memref<64x128xf32, #tpu.memory_space<vmem>> -> memref<1x128xf32, #tpu.memory_space<vmem>>
    %c7_i32_22 = arith.constant 7 : i32
    %c0_i32_23 = arith.constant 0 : i32
    %112 = tpu.memref_slice %arg3[%c7_i32_22, %c0_i32_23] : memref<32x128xf32, #tpu.memory_space<vmem>> -> memref<1x128xf32, #tpu.memory_space<vmem>>
    tpu.enqueue_dma source(%111 : memref<1x128xf32, #tpu.memory_space<vmem>>) target(%112 : memref<1x128xf32, #tpu.memory_space<vmem>>) target_semaphore(%arg4 : memref<!tpu.dma_semaphore, #tpu.memory_space<semaphore_mem>>)
    %c0_i32_24 = arith.constant 0 : i32
    %113 = tpu.memref_slice %arg2[%27, %c0_i32_24] : memref<64x128xf32, #tpu.memory_space<vmem>> -> memref<1x128xf32, #tpu.memory_space<vmem>>
    %c8_i32_25 = arith.constant 8 : i32
    %c0_i32_26 = arith.constant 0 : i32
    %114 = tpu.memref_slice %arg3[%c8_i32_25, %c0_i32_26] : memref<32x128xf32, #tpu.memory_space<vmem>> -> memref<1x128xf32, #tpu.memory_space<vmem>>
    tpu.enqueue_dma source(%113 : memref<1x128xf32, #tpu.memory_space<vmem>>) target(%114 : memref<1x128xf32, #tpu.memory_space<vmem>>) target_semaphore(%arg4 : memref<!tpu.dma_semaphore, #tpu.memory_space<semaphore_mem>>)
    %c0_i32_27 = arith.constant 0 : i32
    %115 = tpu.memref_slice %arg2[%30, %c0_i32_27] : memref<64x128xf32, #tpu.memory_space<vmem>> -> memref<1x128xf32, #tpu.memory_space<vmem>>
    %c9_i32_28 = arith.constant 9 : i32
    %c0_i32_29 = arith.constant 0 : i32
    %116 = tpu.memref_slice %arg3[%c9_i32_28, %c0_i32_29] : memref<32x128xf32, #tpu.memory_space<vmem>> -> memref<1x128xf32, #tpu.memory_space<vmem>>
    tpu.enqueue_dma source(%115 : memref<1x128xf32, #tpu.memory_space<vmem>>) target(%116 : memref<1x128xf32, #tpu.memory_space<vmem>>) target_semaphore(%arg4 : memref<!tpu.dma_semaphore, #tpu.memory_space<semaphore_mem>>)
    %c0_i32_30 = arith.constant 0 : i32
    %117 = tpu.memref_slice %arg2[%33, %c0_i32_30] : memref<64x128xf32, #tpu.memory_space<vmem>> -> memref<1x128xf32, #tpu.memory_space<vmem>>
    %c10_i32_31 = arith.constant 10 : i32
    %c0_i32_32 = arith.constant 0 : i32
    %118 = tpu.memref_slice %arg3[%c10_i32_31, %c0_i32_32] : memref<32x128xf32, #tpu.memory_space<vmem>> -> memref<1x128xf32, #tpu.memory_space<vmem>>
    tpu.enqueue_dma source(%117 : memref<1x128xf32, #tpu.memory_space<vmem>>) target(%118 : memref<1x128xf32, #tpu.memory_space<vmem>>) target_semaphore(%arg4 : memref<!tpu.dma_semaphore, #tpu.memory_space<semaphore_mem>>)
    %c0_i32_33 = arith.constant 0 : i32
    %119 = tpu.memref_slice %arg2[%36, %c0_i32_33] : memref<64x128xf32, #tpu.memory_space<vmem>> -> memref<1x128xf32, #tpu.memory_space<vmem>>
    %c11_i32_34 = arith.constant 11 : i32
    %c0_i32_35 = arith.constant 0 : i32
    %120 = tpu.memref_slice %arg3[%c11_i32_34, %c0_i32_35] : memref<32x128xf32, #tpu.memory_space<vmem>> -> memref<1x128xf32, #tpu.memory_space<vmem>>
    tpu.enqueue_dma source(%119 : memref<1x128xf32, #tpu.memory_space<vmem>>) target(%120 : memref<1x128xf32, #tpu.memory_space<vmem>>) target_semaphore(%arg4 : memref<!tpu.dma_semaphore, #tpu.memory_space<semaphore_mem>>)
    %c0_i32_36 = arith.constant 0 : i32
    %121 = tpu.memref_slice %arg2[%39, %c0_i32_36] : memref<64x128xf32, #tpu.memory_space<vmem>> -> memref<1x128xf32, #tpu.memory_space<vmem>>
    %c12_i32_37 = arith.constant 12 : i32
    %c0_i32_38 = arith.constant 0 : i32
    %122 = tpu.memref_slice %arg3[%c12_i32_37, %c0_i32_38] : memref<32x128xf32, #tpu.memory_space<vmem>> -> memref<1x128xf32, #tpu.memory_space<vmem>>
    tpu.enqueue_dma source(%121 : memref<1x128xf32, #tpu.memory_space<vmem>>) target(%122 : memref<1x128xf32, #tpu.memory_space<vmem>>) target_semaphore(%arg4 : memref<!tpu.dma_semaphore, #tpu.memory_space<semaphore_mem>>)
    %c0_i32_39 = arith.constant 0 : i32
    %123 = tpu.memref_slice %arg2[%42, %c0_i32_39] : memref<64x128xf32, #tpu.memory_space<vmem>> -> memref<1x128xf32, #tpu.memory_space<vmem>>
    %c13_i32_40 = arith.constant 13 : i32
    %c0_i32_41 = arith.constant 0 : i32
    %124 = tpu.memref_slice %arg3[%c13_i32_40, %c0_i32_41] : memref<32x128xf32, #tpu.memory_space<vmem>> -> memref<1x128xf32, #tpu.memory_space<vmem>>
    tpu.enqueue_dma source(%123 : memref<1x128xf32, #tpu.memory_space<vmem>>) target(%124 : memref<1x128xf32, #tpu.memory_space<vmem>>) target_semaphore(%arg4 : memref<!tpu.dma_semaphore, #tpu.memory_space<semaphore_mem>>)
    %c0_i32_42 = arith.constant 0 : i32
    %125 = tpu.memref_slice %arg2[%45, %c0_i32_42] : memref<64x128xf32, #tpu.memory_space<vmem>> -> memref<1x128xf32, #tpu.memory_space<vmem>>
    %c14_i32_43 = arith.constant 14 : i32
    %c0_i32_44 = arith.constant 0 : i32
    %126 = tpu.memref_slice %arg3[%c14_i32_43, %c0_i32_44] : memref<32x128xf32, #tpu.memory_space<vmem>> -> memref<1x128xf32, #tpu.memory_space<vmem>>
    tpu.enqueue_dma source(%125 : memref<1x128xf32, #tpu.memory_space<vmem>>) target(%126 : memref<1x128xf32, #tpu.memory_space<vmem>>) target_semaphore(%arg4 : memref<!tpu.dma_semaphore, #tpu.memory_space<semaphore_mem>>)
    %c0_i32_45 = arith.constant 0 : i32
    %127 = tpu.memref_slice %arg2[%48, %c0_i32_45] : memref<64x128xf32, #tpu.memory_space<vmem>> -> memref<1x128xf32, #tpu.memory_space<vmem>>
    %c15_i32_46 = arith.constant 15 : i32
    %c0_i32_47 = arith.constant 0 : i32
    %128 = tpu.memref_slice %arg3[%c15_i32_46, %c0_i32_47] : memref<32x128xf32, #tpu.memory_space<vmem>> -> memref<1x128xf32, #tpu.memory_space<vmem>>
    tpu.enqueue_dma source(%127 : memref<1x128xf32, #tpu.memory_space<vmem>>) target(%128 : memref<1x128xf32, #tpu.memory_space<vmem>>) target_semaphore(%arg4 : memref<!tpu.dma_semaphore, #tpu.memory_space<semaphore_mem>>)
    %c0_i32_48 = arith.constant 0 : i32
    %129 = tpu.memref_slice %arg2[%51, %c0_i32_48] : memref<64x128xf32, #tpu.memory_space<vmem>> -> memref<1x128xf32, #tpu.memory_space<vmem>>
    %c16_i32_49 = arith.constant 16 : i32
    %c0_i32_50 = arith.constant 0 : i32
    %130 = tpu.memref_slice %arg3[%c16_i32_49, %c0_i32_50] : memref<32x128xf32, #tpu.memory_space<vmem>> -> memref<1x128xf32, #tpu.memory_space<vmem>>
    tpu.enqueue_dma source(%129 : memref<1x128xf32, #tpu.memory_space<vmem>>) target(%130 : memref<1x128xf32, #tpu.memory_space<vmem>>) target_semaphore(%arg4 : memref<!tpu.dma_semaphore, #tpu.memory_space<semaphore_mem>>)
    %c0_i32_51 = arith.constant 0 : i32
    %131 = tpu.memref_slice %arg2[%54, %c0_i32_51] : memref<64x128xf32, #tpu.memory_space<vmem>> -> memref<1x128xf32, #tpu.memory_space<vmem>>
    %c17_i32_52 = arith.constant 17 : i32
    %c0_i32_53 = arith.constant 0 : i32
    %132 = tpu.memref_slice %arg3[%c17_i32_52, %c0_i32_53] : memref<32x128xf32, #tpu.memory_space<vmem>> -> memref<1x128xf32, #tpu.memory_space<vmem>>
    tpu.enqueue_dma source(%131 : memref<1x128xf32, #tpu.memory_space<vmem>>) target(%132 : memref<1x128xf32, #tpu.memory_space<vmem>>) target_semaphore(%arg4 : memref<!tpu.dma_semaphore, #tpu.memory_space<semaphore_mem>>)
    %c0_i32_54 = arith.constant 0 : i32
    %133 = tpu.memref_slice %arg2[%57, %c0_i32_54] : memref<64x128xf32, #tpu.memory_space<vmem>> -> memref<1x128xf32, #tpu.memory_space<vmem>>
    %c18_i32_55 = arith.constant 18 : i32
    %c0_i32_56 = arith.constant 0 : i32
    %134 = tpu.memref_slice %arg3[%c18_i32_55, %c0_i32_56] : memref<32x128xf32, #tpu.memory_space<vmem>> -> memref<1x128xf32, #tpu.memory_space<vmem>>
    tpu.enqueue_dma source(%133 : memref<1x128xf32, #tpu.memory_space<vmem>>) target(%134 : memref<1x128xf32, #tpu.memory_space<vmem>>) target_semaphore(%arg4 : memref<!tpu.dma_semaphore, #tpu.memory_space<semaphore_mem>>)
    %c0_i32_57 = arith.constant 0 : i32
    %135 = tpu.memref_slice %arg2[%60, %c0_i32_57] : memref<64x128xf32, #tpu.memory_space<vmem>> -> memref<1x128xf32, #tpu.memory_space<vmem>>
    %c19_i32_58 = arith.constant 19 : i32
    %c0_i32_59 = arith.constant 0 : i32
    %136 = tpu.memref_slice %arg3[%c19_i32_58, %c0_i32_59] : memref<32x128xf32, #tpu.memory_space<vmem>> -> memref<1x128xf32, #tpu.memory_space<vmem>>
    tpu.enqueue_dma source(%135 : memref<1x128xf32, #tpu.memory_space<vmem>>) target(%136 : memref<1x128xf32, #tpu.memory_space<vmem>>) target_semaphore(%arg4 : memref<!tpu.dma_semaphore, #tpu.memory_space<semaphore_mem>>)
    %c0_i32_60 = arith.constant 0 : i32
    %137 = tpu.memref_slice %arg2[%63, %c0_i32_60] : memref<64x128xf32, #tpu.memory_space<vmem>> -> memref<1x128xf32, #tpu.memory_space<vmem>>
    %c20_i32_61 = arith.constant 20 : i32
    %c0_i32_62 = arith.constant 0 : i32
    %138 = tpu.memref_slice %arg3[%c20_i32_61, %c0_i32_62] : memref<32x128xf32, #tpu.memory_space<vmem>> -> memref<1x128xf32, #tpu.memory_space<vmem>>
    tpu.enqueue_dma source(%137 : memref<1x128xf32, #tpu.memory_space<vmem>>) target(%138 : memref<1x128xf32, #tpu.memory_space<vmem>>) target_semaphore(%arg4 : memref<!tpu.dma_semaphore, #tpu.memory_space<semaphore_mem>>)
    %c0_i32_63 = arith.constant 0 : i32
    %139 = tpu.memref_slice %arg2[%66, %c0_i32_63] : memref<64x128xf32, #tpu.memory_space<vmem>> -> memref<1x128xf32, #tpu.memory_space<vmem>>
    %c21_i32_64 = arith.constant 21 : i32
    %c0_i32_65 = arith.constant 0 : i32
    %140 = tpu.memref_slice %arg3[%c21_i32_64, %c0_i32_65] : memref<32x128xf32, #tpu.memory_space<vmem>> -> memref<1x128xf32, #tpu.memory_space<vmem>>
    tpu.enqueue_dma source(%139 : memref<1x128xf32, #tpu.memory_space<vmem>>) target(%140 : memref<1x128xf32, #tpu.memory_space<vmem>>) target_semaphore(%arg4 : memref<!tpu.dma_semaphore, #tpu.memory_space<semaphore_mem>>)
    %c0_i32_66 = arith.constant 0 : i32
    %141 = tpu.memref_slice %arg2[%69, %c0_i32_66] : memref<64x128xf32, #tpu.memory_space<vmem>> -> memref<1x128xf32, #tpu.memory_space<vmem>>
    %c22_i32_67 = arith.constant 22 : i32
    %c0_i32_68 = arith.constant 0 : i32
    %142 = tpu.memref_slice %arg3[%c22_i32_67, %c0_i32_68] : memref<32x128xf32, #tpu.memory_space<vmem>> -> memref<1x128xf32, #tpu.memory_space<vmem>>
    tpu.enqueue_dma source(%141 : memref<1x128xf32, #tpu.memory_space<vmem>>) target(%142 : memref<1x128xf32, #tpu.memory_space<vmem>>) target_semaphore(%arg4 : memref<!tpu.dma_semaphore, #tpu.memory_space<semaphore_mem>>)
    %c0_i32_69 = arith.constant 0 : i32
    %143 = tpu.memref_slice %arg2[%72, %c0_i32_69] : memref<64x128xf32, #tpu.memory_space<vmem>> -> memref<1x128xf32, #tpu.memory_space<vmem>>
    %c23_i32_70 = arith.constant 23 : i32
    %c0_i32_71 = arith.constant 0 : i32
    %144 = tpu.memref_slice %arg3[%c23_i32_70, %c0_i32_71] : memref<32x128xf32, #tpu.memory_space<vmem>> -> memref<1x128xf32, #tpu.memory_space<vmem>>
    tpu.enqueue_dma source(%143 : memref<1x128xf32, #tpu.memory_space<vmem>>) target(%144 : memref<1x128xf32, #tpu.memory_space<vmem>>) target_semaphore(%arg4 : memref<!tpu.dma_semaphore, #tpu.memory_space<semaphore_mem>>)
    %c0_i32_72 = arith.constant 0 : i32
    %145 = tpu.memref_slice %arg2[%75, %c0_i32_72] : memref<64x128xf32, #tpu.memory_space<vmem>> -> memref<1x128xf32, #tpu.memory_space<vmem>>
    %c24_i32_73 = arith.constant 24 : i32
    %c0_i32_74 = arith.constant 0 : i32
    %146 = tpu.memref_slice %arg3[%c24_i32_73, %c0_i32_74] : memref<32x128xf32, #tpu.memory_space<vmem>> -> memref<1x128xf32, #tpu.memory_space<vmem>>
    tpu.enqueue_dma source(%145 : memref<1x128xf32, #tpu.memory_space<vmem>>) target(%146 : memref<1x128xf32, #tpu.memory_space<vmem>>) target_semaphore(%arg4 : memref<!tpu.dma_semaphore, #tpu.memory_space<semaphore_mem>>)
    %c0_i32_75 = arith.constant 0 : i32
    %147 = tpu.memref_slice %arg2[%78, %c0_i32_75] : memref<64x128xf32, #tpu.memory_space<vmem>> -> memref<1x128xf32, #tpu.memory_space<vmem>>
    %c25_i32_76 = arith.constant 25 : i32
    %c0_i32_77 = arith.constant 0 : i32
    %148 = tpu.memref_slice %arg3[%c25_i32_76, %c0_i32_77] : memref<32x128xf32, #tpu.memory_space<vmem>> -> memref<1x128xf32, #tpu.memory_space<vmem>>
    tpu.enqueue_dma source(%147 : memref<1x128xf32, #tpu.memory_space<vmem>>) target(%148 : memref<1x128xf32, #tpu.memory_space<vmem>>) target_semaphore(%arg4 : memref<!tpu.dma_semaphore, #tpu.memory_space<semaphore_mem>>)
    %c0_i32_78 = arith.constant 0 : i32
    %149 = tpu.memref_slice %arg2[%81, %c0_i32_78] : memref<64x128xf32, #tpu.memory_space<vmem>> -> memref<1x128xf32, #tpu.memory_space<vmem>>
    %c26_i32_79 = arith.constant 26 : i32
    %c0_i32_80 = arith.constant 0 : i32
    %150 = tpu.memref_slice %arg3[%c26_i32_79, %c0_i32_80] : memref<32x128xf32, #tpu.memory_space<vmem>> -> memref<1x128xf32, #tpu.memory_space<vmem>>
    tpu.enqueue_dma source(%149 : memref<1x128xf32, #tpu.memory_space<vmem>>) target(%150 : memref<1x128xf32, #tpu.memory_space<vmem>>) target_semaphore(%arg4 : memref<!tpu.dma_semaphore, #tpu.memory_space<semaphore_mem>>)
    %c0_i32_81 = arith.constant 0 : i32
    %151 = tpu.memref_slice %arg2[%84, %c0_i32_81] : memref<64x128xf32, #tpu.memory_space<vmem>> -> memref<1x128xf32, #tpu.memory_space<vmem>>
    %c27_i32_82 = arith.constant 27 : i32
    %c0_i32_83 = arith.constant 0 : i32
    %152 = tpu.memref_slice %arg3[%c27_i32_82, %c0_i32_83] : memref<32x128xf32, #tpu.memory_space<vmem>> -> memref<1x128xf32, #tpu.memory_space<vmem>>
    tpu.enqueue_dma source(%151 : memref<1x128xf32, #tpu.memory_space<vmem>>) target(%152 : memref<1x128xf32, #tpu.memory_space<vmem>>) target_semaphore(%arg4 : memref<!tpu.dma_semaphore, #tpu.memory_space<semaphore_mem>>)
    %c0_i32_84 = arith.constant 0 : i32
    %153 = tpu.memref_slice %arg2[%87, %c0_i32_84] : memref<64x128xf32, #tpu.memory_space<vmem>> -> memref<1x128xf32, #tpu.memory_space<vmem>>
    %c28_i32_85 = arith.constant 28 : i32
    %c0_i32_86 = arith.constant 0 : i32
    %154 = tpu.memref_slice %arg3[%c28_i32_85, %c0_i32_86] : memref<32x128xf32, #tpu.memory_space<vmem>> -> memref<1x128xf32, #tpu.memory_space<vmem>>
    tpu.enqueue_dma source(%153 : memref<1x128xf32, #tpu.memory_space<vmem>>) target(%154 : memref<1x128xf32, #tpu.memory_space<vmem>>) target_semaphore(%arg4 : memref<!tpu.dma_semaphore, #tpu.memory_space<semaphore_mem>>)
    %c0_i32_87 = arith.constant 0 : i32
    %155 = tpu.memref_slice %arg2[%90, %c0_i32_87] : memref<64x128xf32, #tpu.memory_space<vmem>> -> memref<1x128xf32, #tpu.memory_space<vmem>>
    %c29_i32_88 = arith.constant 29 : i32
    %c0_i32_89 = arith.constant 0 : i32
    %156 = tpu.memref_slice %arg3[%c29_i32_88, %c0_i32_89] : memref<32x128xf32, #tpu.memory_space<vmem>> -> memref<1x128xf32, #tpu.memory_space<vmem>>
    tpu.enqueue_dma source(%155 : memref<1x128xf32, #tpu.memory_space<vmem>>) target(%156 : memref<1x128xf32, #tpu.memory_space<vmem>>) target_semaphore(%arg4 : memref<!tpu.dma_semaphore, #tpu.memory_space<semaphore_mem>>)
    %c0_i32_90 = arith.constant 0 : i32
    %157 = tpu.memref_slice %arg2[%93, %c0_i32_90] : memref<64x128xf32, #tpu.memory_space<vmem>> -> memref<1x128xf32, #tpu.memory_space<vmem>>
    %c30_i32_91 = arith.constant 30 : i32
    %c0_i32_92 = arith.constant 0 : i32
    %158 = tpu.memref_slice %arg3[%c30_i32_91, %c0_i32_92] : memref<32x128xf32, #tpu.memory_space<vmem>> -> memref<1x128xf32, #tpu.memory_space<vmem>>
    tpu.enqueue_dma source(%157 : memref<1x128xf32, #tpu.memory_space<vmem>>) target(%158 : memref<1x128xf32, #tpu.memory_space<vmem>>) target_semaphore(%arg4 : memref<!tpu.dma_semaphore, #tpu.memory_space<semaphore_mem>>)
    %c0_i32_93 = arith.constant 0 : i32
    %159 = tpu.memref_slice %arg2[%96, %c0_i32_93] : memref<64x128xf32, #tpu.memory_space<vmem>> -> memref<1x128xf32, #tpu.memory_space<vmem>>
    %c31_i32_94 = arith.constant 31 : i32
    %c0_i32_95 = arith.constant 0 : i32
    %160 = tpu.memref_slice %arg3[%c31_i32_94, %c0_i32_95] : memref<32x128xf32, #tpu.memory_space<vmem>> -> memref<1x128xf32, #tpu.memory_space<vmem>>
    tpu.enqueue_dma source(%159 : memref<1x128xf32, #tpu.memory_space<vmem>>) target(%160 : memref<1x128xf32, #tpu.memory_space<vmem>>) target_semaphore(%arg4 : memref<!tpu.dma_semaphore, #tpu.memory_space<semaphore_mem>>)
    %c0_i32_96 = arith.constant 0 : i32
    %161 = tpu.memref_slice %arg2[%3, %c0_i32_96] : memref<64x128xf32, #tpu.memory_space<vmem>> -> memref<1x128xf32, #tpu.memory_space<vmem>>
    %c0_i32_97 = arith.constant 0 : i32
    %c0_i32_98 = arith.constant 0 : i32
    %162 = tpu.memref_slice %arg3[%c0_i32_97, %c0_i32_98] : memref<32x128xf32, #tpu.memory_space<vmem>> -> memref<1x128xf32, #tpu.memory_space<vmem>>
    tpu.wait_dma2 semaphore(%arg4 : memref<!tpu.dma_semaphore, #tpu.memory_space<semaphore_mem>>) src(%161 : memref<1x128xf32, #tpu.memory_space<vmem>>) dst(%162 : memref<1x128xf32, #tpu.memory_space<vmem>>)
    %c0_i32_99 = arith.constant 0 : i32
    %163 = tpu.memref_slice %arg2[%6, %c0_i32_99] : memref<64x128xf32, #tpu.memory_space<vmem>> -> memref<1x128xf32, #tpu.memory_space<vmem>>
    %c1_i32_100 = arith.constant 1 : i32
    %c0_i32_101 = arith.constant 0 : i32
    %164 = tpu.memref_slice %arg3[%c1_i32_100, %c0_i32_101] : memref<32x128xf32, #tpu.memory_space<vmem>> -> memref<1x128xf32, #tpu.memory_space<vmem>>
    tpu.wait_dma2 semaphore(%arg4 : memref<!tpu.dma_semaphore, #tpu.memory_space<semaphore_mem>>) src(%163 : memref<1x128xf32, #tpu.memory_space<vmem>>) dst(%164 : memref<1x128xf32, #tpu.memory_space<vmem>>)
    %c0_i32_102 = arith.constant 0 : i32
    %165 = tpu.memref_slice %arg2[%9, %c0_i32_102] : memref<64x128xf32, #tpu.memory_space<vmem>> -> memref<1x128xf32, #tpu.memory_space<vmem>>
    %c2_i32_103 = arith.constant 2 : i32
    %c0_i32_104 = arith.constant 0 : i32
    %166 = tpu.memref_slice %arg3[%c2_i32_103, %c0_i32_104] : memref<32x128xf32, #tpu.memory_space<vmem>> -> memref<1x128xf32, #tpu.memory_space<vmem>>
    tpu.wait_dma2 semaphore(%arg4 : memref<!tpu.dma_semaphore, #tpu.memory_space<semaphore_mem>>) src(%165 : memref<1x128xf32, #tpu.memory_space<vmem>>) dst(%166 : memref<1x128xf32, #tpu.memory_space<vmem>>)
    %c0_i32_105 = arith.constant 0 : i32
    %167 = tpu.memref_slice %arg2[%12, %c0_i32_105] : memref<64x128xf32, #tpu.memory_space<vmem>> -> memref<1x128xf32, #tpu.memory_space<vmem>>
    %c3_i32_106 = arith.constant 3 : i32
    %c0_i32_107 = arith.constant 0 : i32
    %168 = tpu.memref_slice %arg3[%c3_i32_106, %c0_i32_107] : memref<32x128xf32, #tpu.memory_space<vmem>> -> memref<1x128xf32, #tpu.memory_space<vmem>>
    tpu.wait_dma2 semaphore(%arg4 : memref<!tpu.dma_semaphore, #tpu.memory_space<semaphore_mem>>) src(%167 : memref<1x128xf32, #tpu.memory_space<vmem>>) dst(%168 : memref<1x128xf32, #tpu.memory_space<vmem>>)
    %c0_i32_108 = arith.constant 0 : i32
    %169 = tpu.memref_slice %arg2[%15, %c0_i32_108] : memref<64x128xf32, #tpu.memory_space<vmem>> -> memref<1x128xf32, #tpu.memory_space<vmem>>
    %c4_i32_109 = arith.constant 4 : i32
    %c0_i32_110 = arith.constant 0 : i32
    %170 = tpu.memref_slice %arg3[%c4_i32_109, %c0_i32_110] : memref<32x128xf32, #tpu.memory_space<vmem>> -> memref<1x128xf32, #tpu.memory_space<vmem>>
    tpu.wait_dma2 semaphore(%arg4 : memref<!tpu.dma_semaphore, #tpu.memory_space<semaphore_mem>>) src(%169 : memref<1x128xf32, #tpu.memory_space<vmem>>) dst(%170 : memref<1x128xf32, #tpu.memory_space<vmem>>)
    %c0_i32_111 = arith.constant 0 : i32
    %171 = tpu.memref_slice %arg2[%18, %c0_i32_111] : memref<64x128xf32, #tpu.memory_space<vmem>> -> memref<1x128xf32, #tpu.memory_space<vmem>>
    %c5_i32_112 = arith.constant 5 : i32
    %c0_i32_113 = arith.constant 0 : i32
    %172 = tpu.memref_slice %arg3[%c5_i32_112, %c0_i32_113] : memref<32x128xf32, #tpu.memory_space<vmem>> -> memref<1x128xf32, #tpu.memory_space<vmem>>
    tpu.wait_dma2 semaphore(%arg4 : memref<!tpu.dma_semaphore, #tpu.memory_space<semaphore_mem>>) src(%171 : memref<1x128xf32, #tpu.memory_space<vmem>>) dst(%172 : memref<1x128xf32, #tpu.memory_space<vmem>>)
    %c0_i32_114 = arith.constant 0 : i32
    %173 = tpu.memref_slice %arg2[%21, %c0_i32_114] : memref<64x128xf32, #tpu.memory_space<vmem>> -> memref<1x128xf32, #tpu.memory_space<vmem>>
    %c6_i32_115 = arith.constant 6 : i32
    %c0_i32_116 = arith.constant 0 : i32
    %174 = tpu.memref_slice %arg3[%c6_i32_115, %c0_i32_116] : memref<32x128xf32, #tpu.memory_space<vmem>> -> memref<1x128xf32, #tpu.memory_space<vmem>>
    tpu.wait_dma2 semaphore(%arg4 : memref<!tpu.dma_semaphore, #tpu.memory_space<semaphore_mem>>) src(%173 : memref<1x128xf32, #tpu.memory_space<vmem>>) dst(%174 : memref<1x128xf32, #tpu.memory_space<vmem>>)
    %c0_i32_117 = arith.constant 0 : i32
    %175 = tpu.memref_slice %arg2[%24, %c0_i32_117] : memref<64x128xf32, #tpu.memory_space<vmem>> -> memref<1x128xf32, #tpu.memory_space<vmem>>
    %c7_i32_118 = arith.constant 7 : i32
    %c0_i32_119 = arith.constant 0 : i32
    %176 = tpu.memref_slice %arg3[%c7_i32_118, %c0_i32_119] : memref<32x128xf32, #tpu.memory_space<vmem>> -> memref<1x128xf32, #tpu.memory_space<vmem>>
    tpu.wait_dma2 semaphore(%arg4 : memref<!tpu.dma_semaphore, #tpu.memory_space<semaphore_mem>>) src(%175 : memref<1x128xf32, #tpu.memory_space<vmem>>) dst(%176 : memref<1x128xf32, #tpu.memory_space<vmem>>)
    %c0_i32_120 = arith.constant 0 : i32
    %177 = tpu.memref_slice %arg2[%27, %c0_i32_120] : memref<64x128xf32, #tpu.memory_space<vmem>> -> memref<1x128xf32, #tpu.memory_space<vmem>>
    %c8_i32_121 = arith.constant 8 : i32
    %c0_i32_122 = arith.constant 0 : i32
    %178 = tpu.memref_slice %arg3[%c8_i32_121, %c0_i32_122] : memref<32x128xf32, #tpu.memory_space<vmem>> -> memref<1x128xf32, #tpu.memory_space<vmem>>
    tpu.wait_dma2 semaphore(%arg4 : memref<!tpu.dma_semaphore, #tpu.memory_space<semaphore_mem>>) src(%177 : memref<1x128xf32, #tpu.memory_space<vmem>>) dst(%178 : memref<1x128xf32, #tpu.memory_space<vmem>>)
    %c0_i32_123 = arith.constant 0 : i32
    %179 = tpu.memref_slice %arg2[%30, %c0_i32_123] : memref<64x128xf32, #tpu.memory_space<vmem>> -> memref<1x128xf32, #tpu.memory_space<vmem>>
    %c9_i32_124 = arith.constant 9 : i32
    %c0_i32_125 = arith.constant 0 : i32
    %180 = tpu.memref_slice %arg3[%c9_i32_124, %c0_i32_125] : memref<32x128xf32, #tpu.memory_space<vmem>> -> memref<1x128xf32, #tpu.memory_space<vmem>>
    tpu.wait_dma2 semaphore(%arg4 : memref<!tpu.dma_semaphore, #tpu.memory_space<semaphore_mem>>) src(%179 : memref<1x128xf32, #tpu.memory_space<vmem>>) dst(%180 : memref<1x128xf32, #tpu.memory_space<vmem>>)
    %c0_i32_126 = arith.constant 0 : i32
    %181 = tpu.memref_slice %arg2[%33, %c0_i32_126] : memref<64x128xf32, #tpu.memory_space<vmem>> -> memref<1x128xf32, #tpu.memory_space<vmem>>
    %c10_i32_127 = arith.constant 10 : i32
    %c0_i32_128 = arith.constant 0 : i32
    %182 = tpu.memref_slice %arg3[%c10_i32_127, %c0_i32_128] : memref<32x128xf32, #tpu.memory_space<vmem>> -> memref<1x128xf32, #tpu.memory_space<vmem>>
    tpu.wait_dma2 semaphore(%arg4 : memref<!tpu.dma_semaphore, #tpu.memory_space<semaphore_mem>>) src(%181 : memref<1x128xf32, #tpu.memory_space<vmem>>) dst(%182 : memref<1x128xf32, #tpu.memory_space<vmem>>)
    %c0_i32_129 = arith.constant 0 : i32
    %183 = tpu.memref_slice %arg2[%36, %c0_i32_129] : memref<64x128xf32, #tpu.memory_space<vmem>> -> memref<1x128xf32, #tpu.memory_space<vmem>>
    %c11_i32_130 = arith.constant 11 : i32
    %c0_i32_131 = arith.constant 0 : i32
    %184 = tpu.memref_slice %arg3[%c11_i32_130, %c0_i32_131] : memref<32x128xf32, #tpu.memory_space<vmem>> -> memref<1x128xf32, #tpu.memory_space<vmem>>
    tpu.wait_dma2 semaphore(%arg4 : memref<!tpu.dma_semaphore, #tpu.memory_space<semaphore_mem>>) src(%183 : memref<1x128xf32, #tpu.memory_space<vmem>>) dst(%184 : memref<1x128xf32, #tpu.memory_space<vmem>>)
    %c0_i32_132 = arith.constant 0 : i32
    %185 = tpu.memref_slice %arg2[%39, %c0_i32_132] : memref<64x128xf32, #tpu.memory_space<vmem>> -> memref<1x128xf32, #tpu.memory_space<vmem>>
    %c12_i32_133 = arith.constant 12 : i32
    %c0_i32_134 = arith.constant 0 : i32
    %186 = tpu.memref_slice %arg3[%c12_i32_133, %c0_i32_134] : memref<32x128xf32, #tpu.memory_space<vmem>> -> memref<1x128xf32, #tpu.memory_space<vmem>>
    tpu.wait_dma2 semaphore(%arg4 : memref<!tpu.dma_semaphore, #tpu.memory_space<semaphore_mem>>) src(%185 : memref<1x128xf32, #tpu.memory_space<vmem>>) dst(%186 : memref<1x128xf32, #tpu.memory_space<vmem>>)
    %c0_i32_135 = arith.constant 0 : i32
    %187 = tpu.memref_slice %arg2[%42, %c0_i32_135] : memref<64x128xf32, #tpu.memory_space<vmem>> -> memref<1x128xf32, #tpu.memory_space<vmem>>
    %c13_i32_136 = arith.constant 13 : i32
    %c0_i32_137 = arith.constant 0 : i32
    %188 = tpu.memref_slice %arg3[%c13_i32_136, %c0_i32_137] : memref<32x128xf32, #tpu.memory_space<vmem>> -> memref<1x128xf32, #tpu.memory_space<vmem>>
    tpu.wait_dma2 semaphore(%arg4 : memref<!tpu.dma_semaphore, #tpu.memory_space<semaphore_mem>>) src(%187 : memref<1x128xf32, #tpu.memory_space<vmem>>) dst(%188 : memref<1x128xf32, #tpu.memory_space<vmem>>)
    %c0_i32_138 = arith.constant 0 : i32
    %189 = tpu.memref_slice %arg2[%45, %c0_i32_138] : memref<64x128xf32, #tpu.memory_space<vmem>> -> memref<1x128xf32, #tpu.memory_space<vmem>>
    %c14_i32_139 = arith.constant 14 : i32
    %c0_i32_140 = arith.constant 0 : i32
    %190 = tpu.memref_slice %arg3[%c14_i32_139, %c0_i32_140] : memref<32x128xf32, #tpu.memory_space<vmem>> -> memref<1x128xf32, #tpu.memory_space<vmem>>
    tpu.wait_dma2 semaphore(%arg4 : memref<!tpu.dma_semaphore, #tpu.memory_space<semaphore_mem>>) src(%189 : memref<1x128xf32, #tpu.memory_space<vmem>>) dst(%190 : memref<1x128xf32, #tpu.memory_space<vmem>>)
    %c0_i32_141 = arith.constant 0 : i32
    %191 = tpu.memref_slice %arg2[%48, %c0_i32_141] : memref<64x128xf32, #tpu.memory_space<vmem>> -> memref<1x128xf32, #tpu.memory_space<vmem>>
    %c15_i32_142 = arith.constant 15 : i32
    %c0_i32_143 = arith.constant 0 : i32
    %192 = tpu.memref_slice %arg3[%c15_i32_142, %c0_i32_143] : memref<32x128xf32, #tpu.memory_space<vmem>> -> memref<1x128xf32, #tpu.memory_space<vmem>>
    tpu.wait_dma2 semaphore(%arg4 : memref<!tpu.dma_semaphore, #tpu.memory_space<semaphore_mem>>) src(%191 : memref<1x128xf32, #tpu.memory_space<vmem>>) dst(%192 : memref<1x128xf32, #tpu.memory_space<vmem>>)
    %c0_i32_144 = arith.constant 0 : i32
    %193 = tpu.memref_slice %arg2[%51, %c0_i32_144] : memref<64x128xf32, #tpu.memory_space<vmem>> -> memref<1x128xf32, #tpu.memory_space<vmem>>
    %c16_i32_145 = arith.constant 16 : i32
    %c0_i32_146 = arith.constant 0 : i32
    %194 = tpu.memref_slice %arg3[%c16_i32_145, %c0_i32_146] : memref<32x128xf32, #tpu.memory_space<vmem>> -> memref<1x128xf32, #tpu.memory_space<vmem>>
    tpu.wait_dma2 semaphore(%arg4 : memref<!tpu.dma_semaphore, #tpu.memory_space<semaphore_mem>>) src(%193 : memref<1x128xf32, #tpu.memory_space<vmem>>) dst(%194 : memref<1x128xf32, #tpu.memory_space<vmem>>)
    %c0_i32_147 = arith.constant 0 : i32
    %195 = tpu.memref_slice %arg2[%54, %c0_i32_147] : memref<64x128xf32, #tpu.memory_space<vmem>> -> memref<1x128xf32, #tpu.memory_space<vmem>>
    %c17_i32_148 = arith.constant 17 : i32
    %c0_i32_149 = arith.constant 0 : i32
    %196 = tpu.memref_slice %arg3[%c17_i32_148, %c0_i32_149] : memref<32x128xf32, #tpu.memory_space<vmem>> -> memref<1x128xf32, #tpu.memory_space<vmem>>
    tpu.wait_dma2 semaphore(%arg4 : memref<!tpu.dma_semaphore, #tpu.memory_space<semaphore_mem>>) src(%195 : memref<1x128xf32, #tpu.memory_space<vmem>>) dst(%196 : memref<1x128xf32, #tpu.memory_space<vmem>>)
    %c0_i32_150 = arith.constant 0 : i32
    %197 = tpu.memref_slice %arg2[%57, %c0_i32_150] : memref<64x128xf32, #tpu.memory_space<vmem>> -> memref<1x128xf32, #tpu.memory_space<vmem>>
    %c18_i32_151 = arith.constant 18 : i32
    %c0_i32_152 = arith.constant 0 : i32
    %198 = tpu.memref_slice %arg3[%c18_i32_151, %c0_i32_152] : memref<32x128xf32, #tpu.memory_space<vmem>> -> memref<1x128xf32, #tpu.memory_space<vmem>>
    tpu.wait_dma2 semaphore(%arg4 : memref<!tpu.dma_semaphore, #tpu.memory_space<semaphore_mem>>) src(%197 : memref<1x128xf32, #tpu.memory_space<vmem>>) dst(%198 : memref<1x128xf32, #tpu.memory_space<vmem>>)
    %c0_i32_153 = arith.constant 0 : i32
    %199 = tpu.memref_slice %arg2[%60, %c0_i32_153] : memref<64x128xf32, #tpu.memory_space<vmem>> -> memref<1x128xf32, #tpu.memory_space<vmem>>
    %c19_i32_154 = arith.constant 19 : i32
    %c0_i32_155 = arith.constant 0 : i32
    %200 = tpu.memref_slice %arg3[%c19_i32_154, %c0_i32_155] : memref<32x128xf32, #tpu.memory_space<vmem>> -> memref<1x128xf32, #tpu.memory_space<vmem>>
    tpu.wait_dma2 semaphore(%arg4 : memref<!tpu.dma_semaphore, #tpu.memory_space<semaphore_mem>>) src(%199 : memref<1x128xf32, #tpu.memory_space<vmem>>) dst(%200 : memref<1x128xf32, #tpu.memory_space<vmem>>)
    %c0_i32_156 = arith.constant 0 : i32
    %201 = tpu.memref_slice %arg2[%63, %c0_i32_156] : memref<64x128xf32, #tpu.memory_space<vmem>> -> memref<1x128xf32, #tpu.memory_space<vmem>>
    %c20_i32_157 = arith.constant 20 : i32
    %c0_i32_158 = arith.constant 0 : i32
    %202 = tpu.memref_slice %arg3[%c20_i32_157, %c0_i32_158] : memref<32x128xf32, #tpu.memory_space<vmem>> -> memref<1x128xf32, #tpu.memory_space<vmem>>
    tpu.wait_dma2 semaphore(%arg4 : memref<!tpu.dma_semaphore, #tpu.memory_space<semaphore_mem>>) src(%201 : memref<1x128xf32, #tpu.memory_space<vmem>>) dst(%202 : memref<1x128xf32, #tpu.memory_space<vmem>>)
    %c0_i32_159 = arith.constant 0 : i32
    %203 = tpu.memref_slice %arg2[%66, %c0_i32_159] : memref<64x128xf32, #tpu.memory_space<vmem>> -> memref<1x128xf32, #tpu.memory_space<vmem>>
    %c21_i32_160 = arith.constant 21 : i32
    %c0_i32_161 = arith.constant 0 : i32
    %204 = tpu.memref_slice %arg3[%c21_i32_160, %c0_i32_161] : memref<32x128xf32, #tpu.memory_space<vmem>> -> memref<1x128xf32, #tpu.memory_space<vmem>>
    tpu.wait_dma2 semaphore(%arg4 : memref<!tpu.dma_semaphore, #tpu.memory_space<semaphore_mem>>) src(%203 : memref<1x128xf32, #tpu.memory_space<vmem>>) dst(%204 : memref<1x128xf32, #tpu.memory_space<vmem>>)
    %c0_i32_162 = arith.constant 0 : i32
    %205 = tpu.memref_slice %arg2[%69, %c0_i32_162] : memref<64x128xf32, #tpu.memory_space<vmem>> -> memref<1x128xf32, #tpu.memory_space<vmem>>
    %c22_i32_163 = arith.constant 22 : i32
    %c0_i32_164 = arith.constant 0 : i32
    %206 = tpu.memref_slice %arg3[%c22_i32_163, %c0_i32_164] : memref<32x128xf32, #tpu.memory_space<vmem>> -> memref<1x128xf32, #tpu.memory_space<vmem>>
    tpu.wait_dma2 semaphore(%arg4 : memref<!tpu.dma_semaphore, #tpu.memory_space<semaphore_mem>>) src(%205 : memref<1x128xf32, #tpu.memory_space<vmem>>) dst(%206 : memref<1x128xf32, #tpu.memory_space<vmem>>)
    %c0_i32_165 = arith.constant 0 : i32
    %207 = tpu.memref_slice %arg2[%72, %c0_i32_165] : memref<64x128xf32, #tpu.memory_space<vmem>> -> memref<1x128xf32, #tpu.memory_space<vmem>>
    %c23_i32_166 = arith.constant 23 : i32
    %c0_i32_167 = arith.constant 0 : i32
    %208 = tpu.memref_slice %arg3[%c23_i32_166, %c0_i32_167] : memref<32x128xf32, #tpu.memory_space<vmem>> -> memref<1x128xf32, #tpu.memory_space<vmem>>
    tpu.wait_dma2 semaphore(%arg4 : memref<!tpu.dma_semaphore, #tpu.memory_space<semaphore_mem>>) src(%207 : memref<1x128xf32, #tpu.memory_space<vmem>>) dst(%208 : memref<1x128xf32, #tpu.memory_space<vmem>>)
    %c0_i32_168 = arith.constant 0 : i32
    %209 = tpu.memref_slice %arg2[%75, %c0_i32_168] : memref<64x128xf32, #tpu.memory_space<vmem>> -> memref<1x128xf32, #tpu.memory_space<vmem>>
    %c24_i32_169 = arith.constant 24 : i32
    %c0_i32_170 = arith.constant 0 : i32
    %210 = tpu.memref_slice %arg3[%c24_i32_169, %c0_i32_170] : memref<32x128xf32, #tpu.memory_space<vmem>> -> memref<1x128xf32, #tpu.memory_space<vmem>>
    tpu.wait_dma2 semaphore(%arg4 : memref<!tpu.dma_semaphore, #tpu.memory_space<semaphore_mem>>) src(%209 : memref<1x128xf32, #tpu.memory_space<vmem>>) dst(%210 : memref<1x128xf32, #tpu.memory_space<vmem>>)
    %c0_i32_171 = arith.constant 0 : i32
    %211 = tpu.memref_slice %arg2[%78, %c0_i32_171] : memref<64x128xf32, #tpu.memory_space<vmem>> -> memref<1x128xf32, #tpu.memory_space<vmem>>
    %c25_i32_172 = arith.constant 25 : i32
    %c0_i32_173 = arith.constant 0 : i32
    %212 = tpu.memref_slice %arg3[%c25_i32_172, %c0_i32_173] : memref<32x128xf32, #tpu.memory_space<vmem>> -> memref<1x128xf32, #tpu.memory_space<vmem>>
    tpu.wait_dma2 semaphore(%arg4 : memref<!tpu.dma_semaphore, #tpu.memory_space<semaphore_mem>>) src(%211 : memref<1x128xf32, #tpu.memory_space<vmem>>) dst(%212 : memref<1x128xf32, #tpu.memory_space<vmem>>)
    %c0_i32_174 = arith.constant 0 : i32
    %213 = tpu.memref_slice %arg2[%81, %c0_i32_174] : memref<64x128xf32, #tpu.memory_space<vmem>> -> memref<1x128xf32, #tpu.memory_space<vmem>>
    %c26_i32_175 = arith.constant 26 : i32
    %c0_i32_176 = arith.constant 0 : i32
    %214 = tpu.memref_slice %arg3[%c26_i32_175, %c0_i32_176] : memref<32x128xf32, #tpu.memory_space<vmem>> -> memref<1x128xf32, #tpu.memory_space<vmem>>
    tpu.wait_dma2 semaphore(%arg4 : memref<!tpu.dma_semaphore, #tpu.memory_space<semaphore_mem>>) src(%213 : memref<1x128xf32, #tpu.memory_space<vmem>>) dst(%214 : memref<1x128xf32, #tpu.memory_space<vmem>>)
    %c0_i32_177 = arith.constant 0 : i32
    %215 = tpu.memref_slice %arg2[%84, %c0_i32_177] : memref<64x128xf32, #tpu.memory_space<vmem>> -> memref<1x128xf32, #tpu.memory_space<vmem>>
    %c27_i32_178 = arith.constant 27 : i32
    %c0_i32_179 = arith.constant 0 : i32
    %216 = tpu.memref_slice %arg3[%c27_i32_178, %c0_i32_179] : memref<32x128xf32, #tpu.memory_space<vmem>> -> memref<1x128xf32, #tpu.memory_space<vmem>>
    tpu.wait_dma2 semaphore(%arg4 : memref<!tpu.dma_semaphore, #tpu.memory_space<semaphore_mem>>) src(%215 : memref<1x128xf32, #tpu.memory_space<vmem>>) dst(%216 : memref<1x128xf32, #tpu.memory_space<vmem>>)
    %c0_i32_180 = arith.constant 0 : i32
    %217 = tpu.memref_slice %arg2[%87, %c0_i32_180] : memref<64x128xf32, #tpu.memory_space<vmem>> -> memref<1x128xf32, #tpu.memory_space<vmem>>
    %c28_i32_181 = arith.constant 28 : i32
    %c0_i32_182 = arith.constant 0 : i32
    %218 = tpu.memref_slice %arg3[%c28_i32_181, %c0_i32_182] : memref<32x128xf32, #tpu.memory_space<vmem>> -> memref<1x128xf32, #tpu.memory_space<vmem>>
    tpu.wait_dma2 semaphore(%arg4 : memref<!tpu.dma_semaphore, #tpu.memory_space<semaphore_mem>>) src(%217 : memref<1x128xf32, #tpu.memory_space<vmem>>) dst(%218 : memref<1x128xf32, #tpu.memory_space<vmem>>)
    %c0_i32_183 = arith.constant 0 : i32
    %219 = tpu.memref_slice %arg2[%90, %c0_i32_183] : memref<64x128xf32, #tpu.memory_space<vmem>> -> memref<1x128xf32, #tpu.memory_space<vmem>>
    %c29_i32_184 = arith.constant 29 : i32
    %c0_i32_185 = arith.constant 0 : i32
    %220 = tpu.memref_slice %arg3[%c29_i32_184, %c0_i32_185] : memref<32x128xf32, #tpu.memory_space<vmem>> -> memref<1x128xf32, #tpu.memory_space<vmem>>
    tpu.wait_dma2 semaphore(%arg4 : memref<!tpu.dma_semaphore, #tpu.memory_space<semaphore_mem>>) src(%219 : memref<1x128xf32, #tpu.memory_space<vmem>>) dst(%220 : memref<1x128xf32, #tpu.memory_space<vmem>>)
    %c0_i32_186 = arith.constant 0 : i32
    %221 = tpu.memref_slice %arg2[%93, %c0_i32_186] : memref<64x128xf32, #tpu.memory_space<vmem>> -> memref<1x128xf32, #tpu.memory_space<vmem>>
    %c30_i32_187 = arith.constant 30 : i32
    %c0_i32_188 = arith.constant 0 : i32
    %222 = tpu.memref_slice %arg3[%c30_i32_187, %c0_i32_188] : memref<32x128xf32, #tpu.memory_space<vmem>> -> memref<1x128xf32, #tpu.memory_space<vmem>>
    tpu.wait_dma2 semaphore(%arg4 : memref<!tpu.dma_semaphore, #tpu.memory_space<semaphore_mem>>) src(%221 : memref<1x128xf32, #tpu.memory_space<vmem>>) dst(%222 : memref<1x128xf32, #tpu.memory_space<vmem>>)
    %c0_i32_189 = arith.constant 0 : i32
    %223 = tpu.memref_slice %arg2[%96, %c0_i32_189] : memref<64x128xf32, #tpu.memory_space<vmem>> -> memref<1x128xf32, #tpu.memory_space<vmem>>
    %c31_i32_190 = arith.constant 31 : i32
    %c0_i32_191 = arith.constant 0 : i32
    %224 = tpu.memref_slice %arg3[%c31_i32_190, %c0_i32_191] : memref<32x128xf32, #tpu.memory_space<vmem>> -> memref<1x128xf32, #tpu.memory_space<vmem>>
    tpu.wait_dma2 semaphore(%arg4 : memref<!tpu.dma_semaphore, #tpu.memory_space<semaphore_mem>>) src(%223 : memref<1x128xf32, #tpu.memory_space<vmem>>) dst(%224 : memref<1x128xf32, #tpu.memory_space<vmem>>)
    return
  }
  func.func @transform_0(%arg0: i32, %arg1: memref<32xi32, #tpu.memory_space<smem>>) -> (i32, i32) {
    %c0_i32 = arith.constant 0 : i32
    %c0_i32_0 = arith.constant 0 : i32
    %c0_i32_1 = arith.constant 0 : i32
    return %c0_i32, %c0_i32_0 : i32, i32
  }
  func.func @transform_1(%arg0: i32, %arg1: memref<32xi32, #tpu.memory_space<smem>>) -> (i32, i32) {
    %c0_i32 = arith.constant 0 : i32
    %c0_i32_0 = arith.constant 0 : i32
    return %arg0, %c0_i32 : i32, i32
  }
}

</mosaic_0001>

<bundles_post_ra>
// kernel: tpu_custom_call.1
= control target key start
LH: loop header
LB: loop body
LE: loop exit
PB: predicated region body
PF: predicated region fallthrough
CT: control target
= control target key end

     0   :  { %s2191_s9 = smov [#allocation4]   ;;  %s2319_s0 = inlined_call_operand.hbm [shape: s32[32], index: 0, kind: input, shape index: {}]   ;;  %s2320_s1 = inlined_call_operand.hbm [shape: f32[64,128], index: 1, kind: input, shape index: {}]   ;;  %s2321_s2 = inlined_call_operand.hbm [shape: f32[32,128], index: 2, kind: output, shape index: {}]  }
   0x1   :  { %2324 = sst [smem:[#allocation50_spill]] %s2321_s2 }
   0x2   :  { %8 = dma.hbm_to_smem %s2319_s0, 16, %s2191_s9, [#allocation3] }
   0x3   :  { %2183 = dma.done.wait [#allocation3], 16 }
   0x4   :  { %2184 = vsyncadd [#allocation3], 4294967280 }
   0x5   :  { %10 = sfence }
   0x6   :  { %11 = vsyncpa [#allocation6], 0 }
   0x7   :  { %12 = vsyncpa [#allocation7], 0  ;;  %s2192_s12 = smov [#allocation5]  }
   0x8   :  { %s18_s13 = sshll.u32 %s2192_s12, 4  ;;  %s19_s13 = int_to_ptr.vmem [resolvable:$true] %s18_s13 }
   0x9   :  { %s2151_s14 = scalar_lea.vmem %s19_s13, 1024  ;;  %p2156_p1 = scmp.lt.s32.totalorder %s19_s13, %s19_s13 }
   0xa   :  { %p2152_p0 = scmp.ne.s32.totalorder %s19_s13, %s2151_s14  ;;  %p2157_p2 = scmp.lt.s32.totalorder %s2151_s14, %s2151_s14 }
   0xc   :  { %p2158_p3 = por %p2157_p2, %p2156_p1 }
   0xe   :  { %p2159_p4 = pnand %p2158_p3, %p2152_p0 }
  0x10   :  { %2162 = shalt.err (!%p2159_p4)
}
  0x11   :  { %s2322_s15 = smov 128   ;;  %s2323_s16 = smov 8  }
  0x12   :  { %24 = dma.hbm_to_vmem [thread:$0]  %s2320_s1, 1024, %s19_s13, [#allocation6], %s2322_s15, %s2322_s15, %s2323_s16  }
  0x13   :  { %2185 = dma.done.wait [#allocation6], 1024  }
  0x14   :  { %2186 = vsyncadd [#allocation6], 4294966272  ;;  %s2220_s18 = sld [smem:[#allocation4 + $0x1]] }
  0x15   :  { %s2222_s19 = sld [smem:[#allocation4 + $0x2]] }
  0x16   :  { %s2224_s20 = sld [smem:[#allocation4 + $0x3]] }
  0x17   :  { %s2226_s21 = sld [smem:[#allocation4 + $0x4]] }
  0x18   :  { %s2228_s22 = sld [smem:[#allocation4 + $0x5]] }
  0x19   :  { %s2230_s23 = sld [smem:[#allocation4 + $0x6]] }
  0x1a   :  { %s2232_s24 = sld [smem:[#allocation4 + $0x7]] }
  0x1b   :  { %s2234_s25 = sld [smem:[#allocation4 + $0x8]] }
  0x1c   :  { %s2236_s26 = sld [smem:[#allocation4 + $0x9]] }
  0x1d   :  { %s2238_s1 = sld [smem:[#allocation4 + $0xa]] }
  0x1e   :  { %s2240_s27 = sld [smem:[#allocation4 + $0xb]] }
  0x1f   :  { %s2242_s28 = sld [smem:[#allocation4 + $0xc]] }
  0x20   :  { %s2244_s29 = sld [smem:[#allocation4 + $0xd]] }
  0x21   :  { %s2246_s30 = sld [smem:[#allocation4 + $0xe]] }
  0x22   :  { %s2248_s3 = sld [smem:[#allocation4 + $0xf]] }
  0x23   :  { %s2250_s4 = sld [smem:[#allocation4 + $0x10]] }
  0x24   :  { %s2252_s5 = sld [smem:[#allocation4 + $0x11]] }
  0x25   :  { %s2254_s6 = sld [smem:[#allocation4 + $0x12]] }
  0x26   :  { %s2256_s7 = sld [smem:[#allocation4 + $0x13]] }
  0x27   :  { %s2258_s8 = sld [smem:[#allocation4 + $0x14]] }
  0x28   :  { %s2260_s9 = sld [smem:[#allocation4 + $0x15]] }
  0x29   :  { %s2262_s10 = sld [smem:[#allocation4 + $0x16]] }
  0x2a   :  { %s2264_s11 = sld [smem:[#allocation4 + $0x17]] }
  0x2b   :  { %s2266_s12 = sld [smem:[#allocation4 + $0x18]] }
  0x2c   :  { %s2268_s13 = sld [smem:[#allocation4 + $0x19]] }
  0x2d   :  { %s2270_s14 = sld [smem:[#allocation4 + $0x1a]] }
  0x2e   :  { %2325 = sst [smem:[#allocation45_spill]] %s2260_s9 }
  0x2f   :  { %2326 = sst [smem:[#allocation46_spill]] %s2262_s10 }
  0x30   :  { %s2272_s0 = sld [smem:[#allocation4 + $0x1b]] }
  0x31   :  { %2327 = sst [smem:[#allocation47_spill]] %s2266_s12 }
  0x32   :  { %s2274_s17 = sld [smem:[#allocation4 + $0x1c]] }
  0x33   :  { %s2276_s15 = sld [smem:[#allocation4 + $0x1d]] }
  0x34   :  { %s2278_s16 = sld [smem:[#allocation4 + $0x1e]] }
  0x35   :  { %s2280_s2 = sld [smem:[#allocation4 + $0x1f]] }
  0x36   :  { %2328 = sst [smem:[#allocation48_spill]] %s2272_s0 }
  0x37   :  { %s29_s9 = sld [smem:[#allocation4]] }
  0x39   :  { %2329 = sst [smem:[#allocation49_spill]] %s2276_s15 }
  0x3d   :  { %s92_s10 = scalar_lea.vmem [#allocation5], %s29_s9 }
  0x3e   :  { %v111_v0 = vld [vmem:[%s92_s10] sm:$0x1] }
  0x3f   :  { %112 = vst [vmem:[#allocation8] sm:$0x1] %v111_v0 }
  0x40   :  { %138 = vsyncadd [#allocation2], 16  ;;  %s139_s12 = scalar_lea.vmem [#allocation5], %s2220_s18 }
  0x41   :  { %v159_v1 = vld [vmem:[%s139_s12] sm:$0x1] }
  0x42   :  { %160 = vst [vmem:[#allocation8 + $0x1] sm:$0x1] %v159_v1 }
  0x43   :  { %186 = vsyncadd [#allocation2], 16  ;;  %s187_s0 = scalar_lea.vmem [#allocation5], %s2222_s19 }
  0x44   :  { %v207_v2 = vld [vmem:[%s187_s0] sm:$0x1] }
  0x45   :  { %208 = vst [vmem:[#allocation8 + $0x2] sm:$0x1] %v207_v2 }
  0x46   :  { %234 = vsyncadd [#allocation2], 16  ;;  %s235_s15 = scalar_lea.vmem [#allocation5], %s2224_s20 }
  0x47   :  { %v255_v3 = vld [vmem:[%s235_s15] sm:$0x1] }
  0x48   :  { %256 = vst [vmem:[#allocation8 + $0x3] sm:$0x1] %v255_v3 }
  0x49   :  { %282 = vsyncadd [#allocation2], 16  ;;  %s283_s9 = scalar_lea.vmem [#allocation5], %s2226_s21 }
  0x4a   :  { %v303_v4 = vld [vmem:[%s283_s9] sm:$0x1] }
  0x4b   :  { %304 = vst [vmem:[#allocation8 + $0x4] sm:$0x1] %v303_v4 }
  0x4c   :  { %330 = vsyncadd [#allocation2], 16  ;;  %s331_s18 = scalar_lea.vmem [#allocation5], %s2228_s22 }
  0x4d   :  { %v351_v5 = vld [vmem:[%s331_s18] sm:$0x1] }
  0x4e   :  { %352 = vst [vmem:[#allocation8 + $0x5] sm:$0x1] %v351_v5 }
  0x4f   :  { %378 = vsyncadd [#allocation2], 16  ;;  %s379_s19 = scalar_lea.vmem [#allocation5], %s2230_s23 }
  0x50   :  { %v399_v6 = vld [vmem:[%s379_s19] sm:$0x1] }
  0x51   :  { %400 = vst [vmem:[#allocation8 + $0x6] sm:$0x1] %v399_v6 }
  0x52   :  { %426 = vsyncadd [#allocation2], 16  ;;  %s427_s20 = scalar_lea.vmem [#allocation5], %s2232_s24 }
  0x53   :  { %v447_v7 = vld [vmem:[%s427_s20] sm:$0x1] }
  0x54   :  { %448 = vst [vmem:[#allocation8 + $0x7] sm:$0x1] %v447_v7 }
  0x55   :  { %474 = vsyncadd [#allocation2], 16  ;;  %s475_s15 = scalar_lea.vmem [#allocation5], %s2234_s25 }
  0x56   :  { %v495_v8 = vld [vmem:[%s475_s15] sm:$0x1] }
  0x57   :  { %496 = vst [vmem:[#allocation8 + $0x8] sm:$0x1] %v495_v8 }
  0x58   :  { %522 = vsyncadd [#allocation2], 16  ;;  %s523_s21 = scalar_lea.vmem [#allocation5], %s2236_s26 }
  0x59   :  { %v543_v9 = vld [vmem:[%s523_s21] sm:$0x1] }
  0x5a   :  { %544 = vst [vmem:[#allocation8 + $0x9] sm:$0x1] %v543_v9 }
  0x5b   :  { %570 = vsyncadd [#allocation2], 16  ;;  %s571_s22 = scalar_lea.vmem [#allocation5], %s2238_s1 }
  0x5c   :  { %v591_v10 = vld [vmem:[%s571_s22] sm:$0x1] }
  0x5d   :  { %592 = vst [vmem:[#allocation8 + $0xa] sm:$0x1] %v591_v10 }
  0x5e   :  { %618 = vsyncadd [#allocation2], 16  ;;  %s619_s23 = scalar_lea.vmem [#allocation5], %s2240_s27 }
  0x5f   :  { %v639_v11 = vld [vmem:[%s619_s23] sm:$0x1] }
  0x60   :  { %640 = vst [vmem:[#allocation8 + $0xb] sm:$0x1] %v639_v11 }
  0x61   :  { %666 = vsyncadd [#allocation2], 16  ;;  %s667_s24 = scalar_lea.vmem [#allocation5], %s2242_s28 }
  0x62   :  { %v687_v12 = vld [vmem:[%s667_s24] sm:$0x1] }
  0x63   :  { %688 = vst [vmem:[#allocation8 + $0xc] sm:$0x1] %v687_v12 }
  0x64   :  { %714 = vsyncadd [#allocation2], 16  ;;  %s715_s25 = scalar_lea.vmem [#allocation5], %s2244_s29 }
  0x65   :  { %v735_v13 = vld [vmem:[%s715_s25] sm:$0x1] }
  0x66   :  { %736 = vst [vmem:[#allocation8 + $0xd] sm:$0x1] %v735_v13 }
  0x67   :  { %762 = vsyncadd [#allocation2], 16  ;;  %s763_s26 = scalar_lea.vmem [#allocation5], %s2246_s30 }
  0x68   :  { %v783_v14 = vld [vmem:[%s763_s26] sm:$0x1] }
  0x69   :  { %784 = vst [vmem:[#allocation8 + $0xe] sm:$0x1] %v783_v14 }
  0x6a   :  { %810 = vsyncadd [#allocation2], 16  ;;  %s811_s1 = scalar_lea.vmem [#allocation5], %s2248_s3 }
  0x6b   :  { %v831_v15 = vld [vmem:[%s811_s1] sm:$0x1] }
  0x6c   :  { %832 = vst [vmem:[#allocation8 + $0xf] sm:$0x1] %v831_v15 }
  0x6d   :  { %858 = vsyncadd [#allocation2], 16  ;;  %s859_s27 = scalar_lea.vmem [#allocation5], %s2250_s4 }
  0x6e   :  { %v879_v16 = vld [vmem:[%s859_s27] sm:$0x1] }
  0x6f   :  { %880 = vst [vmem:[#allocation8 + $0x10] sm:$0x1] %v879_v16 }
  0x70   :  { %906 = vsyncadd [#allocation2], 16  ;;  %s907_s28 = scalar_lea.vmem [#allocation5], %s2252_s5 }
  0x71   :  { %v927_v17 = vld [vmem:[%s907_s28] sm:$0x1] }
  0x72   :  { %928 = vst [vmem:[#allocation8 + $0x11] sm:$0x1] %v927_v17 }
  0x73   :  { %954 = vsyncadd [#allocation2], 16  ;;  %s955_s29 = scalar_lea.vmem [#allocation5], %s2254_s6 }
  0x74   :  { %v975_v18 = vld [vmem:[%s955_s29] sm:$0x1] }
  0x75   :  { %976 = vst [vmem:[#allocation8 + $0x12] sm:$0x1] %v975_v18 }
  0x76   :  { %1002 = vsyncadd [#allocation2], 16  ;;  %s1003_s30 = scalar_lea.vmem [#allocation5], %s2256_s7 }
  0x77   :  { %v1023_v19 = vld [vmem:[%s1003_s30] sm:$0x1] }
  0x78   :  { %1024 = vst [vmem:[#allocation8 + $0x13] sm:$0x1] %v1023_v19 }
  0x79   :  { %1050 = vsyncadd [#allocation2], 16  ;;  %s1051_s3 = scalar_lea.vmem [#allocation5], %s2258_s8 }
  0x7a   :  { %v1071_v20 = vld [vmem:[%s1051_s3] sm:$0x1] }
  0x7b   :  { %1072 = vst [vmem:[#allocation8 + $0x14] sm:$0x1] %v1071_v20 }
  0x7c   :  { %1098 = vsyncadd [#allocation2], 16  ;;  %s2330_s4 = sld [smem:[#allocation45_spill]] }
  0x82   :  { %s1099_s5 = scalar_lea.vmem [#allocation5], %s2330_s4 }
  0x83   :  { %v1119_v21 = vld [vmem:[%s1099_s5] sm:$0x1] }
  0x84   :  { %1120 = vst [vmem:[#allocation8 + $0x15] sm:$0x1] %v1119_v21 }
  0x85   :  { %1146 = vsyncadd [#allocation2], 16  ;;  %s2331_s10 = sld [smem:[#allocation46_spill]] }
  0x8b   :  { %s1147_s6 = scalar_lea.vmem [#allocation5], %s2331_s10 }
  0x8c   :  { %v1167_v22 = vld [vmem:[%s1147_s6] sm:$0x1] }
  0x8d   :  { %1168 = vst [vmem:[#allocation8 + $0x16] sm:$0x1] %v1167_v22 }
  0x8e   :  { %1194 = vsyncadd [#allocation2], 16  ;;  %s1195_s7 = scalar_lea.vmem [#allocation5], %s2264_s11 }
  0x8f   :  { %v1215_v23 = vld [vmem:[%s1195_s7] sm:$0x1] }
  0x90   :  { %1216 = vst [vmem:[#allocation8 + $0x17] sm:$0x1] %v1215_v23 }
  0x91   :  { %1242 = vsyncadd [#allocation2], 16  ;;  %s2332_s12 = sld [smem:[#allocation47_spill]] }
  0x97   :  { %s1243_s8 = scalar_lea.vmem [#allocation5], %s2332_s12 }
  0x98   :  { %v1263_v24 = vld [vmem:[%s1243_s8] sm:$0x1] }
  0x99   :  { %1264 = vst [vmem:[#allocation8 + $0x18] sm:$0x1] %v1263_v24 }
  0x9a   :  { %1290 = vsyncadd [#allocation2], 16  ;;  %s1291_s0 = scalar_lea.vmem [#allocation5], %s2268_s13 }
  0x9b   :  { %v1311_v25 = vld [vmem:[%s1291_s0] sm:$0x1] }
  0x9c   :  { %1312 = vst [vmem:[#allocation8 + $0x19] sm:$0x1] %v1311_v25 }
  0x9d   :  { %1338 = vsyncadd [#allocation2], 16  ;;  %s1339_s9 = scalar_lea.vmem [#allocation5], %s2270_s14 }
  0x9e   :  { %v1359_v26 = vld [vmem:[%s1339_s9] sm:$0x1] }
  0x9f   :  { %1360 = vst [vmem:[#allocation8 + $0x1a] sm:$0x1] %v1359_v26 }
  0xa0   :  { %1386 = vsyncadd [#allocation2], 16  ;;  %s2333_s18 = sld [smem:[#allocation48_spill]] }
  0xa6   :  { %s1387_s11 = scalar_lea.vmem [#allocation5], %s2333_s18 }
  0xa7   :  { %v1407_v27 = vld [vmem:[%s1387_s11] sm:$0x1] }
  0xa8   :  { %1408 = vst [vmem:[#allocation8 + $0x1b] sm:$0x1] %v1407_v27 }
  0xa9   :  { %1434 = vsyncadd [#allocation2], 16  ;;  %s1435_s19 = scalar_lea.vmem [#allocation5], %s2274_s17 }
  0xaa   :  { %v1455_v28 = vld [vmem:[%s1435_s19] sm:$0x1] }
  0xab   :  { %1456 = vst [vmem:[#allocation8 + $0x1c] sm:$0x1] %v1455_v28 }
  0xac   :  { %1482 = vsyncadd [#allocation2], 16  ;;  %s2334_s20 = sld [smem:[#allocation49_spill]] }
  0xb2   :  { %s1483_s13 = scalar_lea.vmem [#allocation5], %s2334_s20 }
  0xb3   :  { %v1503_v29 = vld [vmem:[%s1483_s13] sm:$0x1] }
  0xb4   :  { %1504 = vst [vmem:[#allocation8 + $0x1d] sm:$0x1] %v1503_v29 }
  0xb5   :  { %1530 = vsyncadd [#allocation2], 16  ;;  %s1531_s14 = scalar_lea.vmem [#allocation5], %s2278_s16 }
  0xb6   :  { %v1551_v30 = vld [vmem:[%s1531_s14] sm:$0x1] }
  0xb7   :  { %1552 = vst [vmem:[#allocation8 + $0x1e] sm:$0x1] %v1551_v30 }
  0xb8   :  { %1578 = vsyncadd [#allocation2], 16  ;;  %s1579_s15 = scalar_lea.vmem [#allocation5], %s2280_s2 }
  0xb9   :  { %v1599_v31 = vld [vmem:[%s1579_s15] sm:$0x1] }
  0xba   :  { %1600 = vst [vmem:[#allocation8 + $0x1f] sm:$0x1] %v1599_v31 }
  0xbb   :  { %1626 = vsyncadd [#allocation2], 16 }
  0xbc   :  { %2187 = dma.done.wait [#allocation2], 512 }
  0xbd   :  { %2188 = vsyncadd [#allocation2], 4294966784  ;;  %s2195_s17 = smov [#allocation8]  }
  0xbe   :  { %s1697_s21 = sshll.u32 %s2195_s17, 4  ;;  %s1698_s21 = int_to_ptr.vmem [resolvable:$true] %s1697_s21 }
  0xbf   :  { %s2163_s22 = scalar_lea.vmem %s1698_s21, 512  ;;  %p2168_p6 = scmp.lt.s32.totalorder %s1698_s21, %s1698_s21 }
  0xc0   :  { %p2164_p5 = scmp.ne.s32.totalorder %s1698_s21, %s2163_s22  ;;  %p2169_p7 = scmp.lt.s32.totalorder %s2163_s22, %s2163_s22 }
  0xc2   :  { %p2170_p8 = por %p2169_p7, %p2168_p6 }
  0xc4   :  { %p2171_p9 = pnand %p2170_p8, %p2164_p5 }
  0xc6   :  { %2174 = shalt.err (!%p2171_p9)
}
  0xc7   :  { %s2335_s16 = smov 8   ;;  %s2336_s23 = smov 128  }
  0xc8   :  { %s2337_s25 = sld [smem:[#allocation50_spill]] }
  0xce   :  { %1703 = dma.vmem_to_hbm [thread:$0]  %s1698_s21, 512, %s2337_s25, [#allocation7], %s2336_s23, %s2336_s23, %s2335_s16  }
  0xcf   :  { %2189 = dma.done.wait [#allocation7], 512  }
  0xd0   :  { %2190 = vsyncadd [#allocation7], 4294966784 }
  0xd1   :  { %1707 = vsyncpa [#allocation6], 1 }
  0xd2   :  { %1708 = vsyncpa [#allocation7], 1 }
  0xd3   :  { %1709 = vsyncmov [#allocation2] }
  0xd6   :  { %s1710_s26 = vpop.sfrf %1709 }
  0xd7   :  { %p2129_p10 = scmp.ne.s32.totalorder %s1710_s26, 0 }
  0xd9   :  { %1714 = shalt.err (%p2129_p10)  }

</bundles_post_ra>
